<compile_context>
chip_gen: v5e
topology: v5e:2x2
jax: 0.10.0
libtpu: 0.0.40
codegen_flags: <defaults>
</compile_context>

<pallas_src>
import jax
import jax.numpy as jnp
from jax import lax
from jax.experimental import pallas as pl
from jax.experimental.pallas import tpu as pltpu


def gold_lstm_kernel(xg_ref, w_hh_ref, fc_w_ref, fc_b_ref, out_ref):
    """Recurrent part of the LSTM + final Linear.

    xg_ref:   (T, Bp, 4H) precomputed x @ W_ih + (b_ih + b_hh), gate order
              (i, f, o, g), g-gate columns pre-scaled by 2 (tanh-via-sigmoid).
    w_hh_ref: (H, 4H) bf16 hidden->gates, pre-transposed, same gate order/scale.
    fc_w_ref: (1, H)  final linear weight.
    fc_b_ref: (1, 1)  final linear bias (SMEM scalar).
    out_ref:  (1, Bp) fc(last hidden state), lane-major over batch.
    """
    T = xg_ref.shape[0]
    Bp = xg_ref.shape[1]
    H = fc_w_ref.shape[1]

    w_hh = w_hh_ref[...]  # (H, 4H) bf16, loop-invariant: load once, stays in vregs.

    def fast_sigmoid(z):
        # sigma(z) = 1 / (1 + exp(-z)); the reciprocal goes to the EUP vrcp slot.
        return pl.reciprocal(1.0 + jnp.exp(-z), approx=True)

    # ---- t = 0 peeled: h0 = c0 = 0 -> gates are just xg[0]; c = i*g. ----
    act0 = fast_sigmoid(xg_ref[0])                          # (Bp, 4H)
    c = act0[:, 0:H] * (2.0 * act0[:, 3 * H:] - 1.0)        # i0 * tanh(z_g0)
    h = act0[:, 2 * H:3 * H] * jnp.tanh(c)                  # o0 * tanh(c0)

    # ---- t = 1 .. T-1: only the serial h @ W_hh matmul is on the chain. ----
    def step(t, carry):
        h, c = carry
        gates = xg_ref[t] + jnp.dot(h.astype(jnp.bfloat16), w_hh,
                                    preferred_element_type=jnp.float32)
        act = fast_sigmoid(gates)            # ONE EUP sigmoid over (Bp, 4H)
        i_g = act[:, 0:H]
        f_g = act[:, H:2 * H]
        o_g = act[:, 2 * H:3 * H]
        g_g = 2.0 * act[:, 3 * H:] - 1.0     # == tanh of the unscaled preact
        c = f_g * c + i_g * g_g
        h = o_g * jnp.tanh(c)
        return (h, c)

    # T is static and small -> fully unroll so the LLO scheduler overlaps
    # MXU/EUP latency across steps.
    h, c = lax.fori_loop(1, T, step, (h, c), unroll=True)

    # ---- fc epilogue: VPU multiply + lane reduce, lane-major (1, Bp) output.
    fc = jnp.sum(h * fc_w_ref[...], axis=1)                 # (Bp,)
    out_ref[...] = (fc + fc_b_ref[0, 0]).reshape(1, Bp)


def gold_lstm_forward(x, params):
    """x: (B, T, I) float32 (PyTorch batch_first). Returns (B,) float32."""
    B, T, I = x.shape
    H = params["w_hh"].shape[1]          # w_hh is (4H, H)
    # Pad batch to the 8-sublane width so h/c/gates are full (8, 128) vregs.
    Bp = max(8, ((B + 7) // 8) * 8)

    # Gate order (i, f, g, o) -> (i, f, o, g): the sigmoid gates form one
    # contiguous slab inside the kernel.
    perm = jnp.concatenate([jnp.arange(0, 2 * H),
                            jnp.arange(3 * H, 4 * H),
                            jnp.arange(2 * H, 3 * H)])
    # Pre-scale the g-gate rows by 2 so tanh(z_g) == 2*sigmoid(2*z_g) - 1 and a
    # single in-kernel sigmoid covers all four gates.
    scale = jnp.concatenate([jnp.ones((3 * H,), jnp.float32),
                             jnp.full((H,), 2.0, jnp.float32)])
    w_ih_p = params["w_ih"][perm] * scale[:, None]          # (4H, I)
    w_hh_p = params["w_hh"][perm] * scale[:, None]          # (4H, H)
    b_p = (params["b_ih"] + params["b_hh"])[perm] * scale   # (4H,)

    # Zero-pad batch; padded rows produce finite garbage that is sliced away.
    x_pad = jnp.zeros((Bp, T, I), jnp.float32).at[:B].set(x.astype(jnp.float32))

    # Hoisted input projection for all timesteps at once (plain XLA), bias
    # fused, time-major for the kernel: (T, Bp, 4H).
    xg = jnp.einsum("bti,gi->tbg", x_pad, w_ih_p) + b_p

    # bf16 operands for the recurrent matmul -> single MXU pass per step
    # (accumulation stays f32 inside the kernel).
    w_hh_t = w_hh_p.T.astype(jnp.bfloat16)                  # (H, 4H)
    fc_w = params["fc_w"].astype(jnp.float32)               # (1, H)
    fc_b = params["fc_b"].reshape(1, 1).astype(jnp.float32)

    vmem = pl.BlockSpec(memory_space=pltpu.MemorySpace.VMEM)
    smem = pl.BlockSpec(memory_space=pltpu.MemorySpace.SMEM)
    out = pl.pallas_call(
        gold_lstm_kernel,
        out_shape=jax.ShapeDtypeStruct((1, Bp), jnp.float32),
        in_specs=[vmem, vmem, vmem, smem],
        out_specs=vmem,
    )(xg, w_hh_t, fc_w, fc_b)
    return out[0, :B]   # matches PyTorch .squeeze(1)


def gold_lstm_reference(x, params):
    """Pure-JAX f32 reference matching torch.nn.LSTM (i,f,g,o) + Linear."""
    B, T, I = x.shape
    H = params["w_hh"].shape[1]
    w_ih_t = params["w_ih"].T
    w_hh_t = params["w_hh"].T
    b = params["b_ih"] + params["b_hh"]

    def step(carry, x_t):
        h, c = carry
        gates = x_t @ w_ih_t + h @ w_hh_t + b
        i_g = jax.nn.sigmoid(gates[:, 0:H])
        f_g = jax.nn.sigmoid(gates[:, H:2 * H])
        g_g = jnp.tanh(gates[:, 2 * H:3 * H])
        o_g = jax.nn.sigmoid(gates[:, 3 * H:4 * H])
        c_new = f_g * c + i_g * g_g
        h_new = o_g * jnp.tanh(c_new)
        return (h_new, c_new), None

    h0 = jnp.zeros((B, H), jnp.float32)
    c0 = jnp.zeros((B, H), jnp.float32)
    (h_last, _), _ = lax.scan(step, (h0, c0), jnp.transpose(x, (1, 0, 2)))
    return (h_last @ params["fc_w"].T + params["fc_b"])[:, 0]


def init_params(key, input_size, hidden_size):
    """Deterministic PyTorch-like init: U(-k, k), k = 1/sqrt(hidden_size)."""
    k = 1.0 / jnp.sqrt(hidden_size)
    keys = jax.random.split(key, 6)
    H4 = 4 * hidden_size
    return {
        "w_ih": jax.random.uniform(keys[0], (H4, input_size), jnp.float32, -k, k),
        "w_hh": jax.random.uniform(keys[1], (H4, hidden_size), jnp.float32, -k, k),
        "b_ih": jax.random.uniform(keys[2], (H4,), jnp.float32, -k, k),
        "b_hh": jax.random.uniform(keys[3], (H4,), jnp.float32, -k, k),
        "fc_w": jax.random.uniform(keys[4], (1, hidden_size), jnp.float32, -k, k),
        "fc_b": jax.random.uniform(keys[5], (1,), jnp.float32, -k, k),
    }


if __name__ == "__main__":
    # Small shapes consistent with GoldLSTM: batch=4, seq=8, input_size=1,
    # hidden_size=32 (4H = 128 -> lane-aligned gates).
    B, T, I, H = 4, 8, 1, 32

    key = jax.random.PRNGKey(0)
    k_x, k_p = jax.random.split(key)
    x = jax.random.normal(k_x, (B, T, I), dtype=jnp.float32)
    params = init_params(k_p, I, H)

    out = gold_lstm_forward(x, params)
    out = jax.block_until_ready(out)

    ref = gold_lstm_reference(x, params)
    assert out.shape == (B,)
    # bf16 MXU operands + approx-reciprocal sigmoid (perf-review items) perturb
    # gate pre-activations at the ~1e-3 level; tolerance is sized for that.
    err = float(jnp.max(jnp.abs(out - ref)))
    assert err < 2e-2, (err, out, ref)

    print("KERNEL_OK")
</pallas_src>

<mosaic_0001>
module attributes {stable_mosaic.version = 11 : i64} {
  func.func @gold_lstm_kernel(%arg0: memref<8x8x128xf32, #tpu.memory_space<vmem>>, %arg1: memref<32x128xbf16, #tpu.memory_space<vmem>>, %arg2: memref<1x32xf32, #tpu.memory_space<vmem>>, %arg3: memref<1x1xf32, #tpu.memory_space<smem>>, %arg4: memref<1x8xf32, #tpu.memory_space<vmem>>) attributes {dimension_semantics = [], scalar_prefetch = 0 : i64, scratch_operands = 0 : i64, tpu.core_type = #tpu.core_type<tc>} {
    %c0 = arith.constant 0 : index
    %c0_0 = arith.constant 0 : index
    %0 = vector.load %arg1[%c0, %c0_0] : memref<32x128xbf16, #tpu.memory_space<vmem>>, vector<32x128xbf16>
    %c0_1 = arith.constant 0 : index
    %c0_2 = arith.constant 0 : index
    %c0_3 = arith.constant 0 : index
    %1 = vector.load %arg0[%c0_1, %c0_2, %c0_3] : memref<8x8x128xf32, #tpu.memory_space<vmem>>, vector<1x8x128xf32>
    %2 = vector.shape_cast %1 : vector<1x8x128xf32> to vector<8x128xf32>
    %cst = arith.constant 0.000000e+00 : f32
    %3 = vector.broadcast %cst : f32 to vector<8x128xf32>
    %4 = arith.subf %3, %2 : vector<8x128xf32>
    %5 = math.exp %4 : vector<8x128xf32>
    %cst_4 = arith.constant 1.000000e+00 : f32
    %6 = vector.broadcast %cst_4 : f32 to vector<8x128xf32>
    %7 = arith.addf %6, %5 : vector<8x128xf32>
    %8 = tpu.reciprocal %7 {approx = true} : vector<8x128xf32> -> vector<8x128xf32>
    %9 = vector.extract_strided_slice %8 {offsets = [0, 0], sizes = [8, 32], strides = [1, 1]} : vector<8x128xf32> to vector<8x32xf32>
    %10 = vector.extract_strided_slice %8 {offsets = [0, 96], sizes = [8, 32], strides = [1, 1]} : vector<8x128xf32> to vector<8x32xf32>
    %cst_5 = arith.constant 2.000000e+00 : f32
    %11 = vector.broadcast %cst_5 : f32 to vector<8x32xf32>
    %12 = arith.mulf %11, %10 : vector<8x32xf32>
    %cst_6 = arith.constant 1.000000e+00 : f32
    %13 = vector.broadcast %cst_6 : f32 to vector<8x32xf32>
    %14 = arith.subf %12, %13 : vector<8x32xf32>
    %15 = arith.mulf %9, %14 : vector<8x32xf32>
    %16 = vector.extract_strided_slice %8 {offsets = [0, 64], sizes = [8, 32], strides = [1, 1]} : vector<8x128xf32> to vector<8x32xf32>
    %17 = math.tanh %15 : vector<8x32xf32>
    %18 = arith.mulf %16, %17 : vector<8x32xf32>
    %c1_i32 = arith.constant 1 : i32
    %19 = arith.index_cast %c1_i32 : i32 to index
    %c0_7 = arith.constant 0 : index
    %c0_8 = arith.constant 0 : index
    %20 = vector.load %arg0[%19, %c0_7, %c0_8] : memref<8x8x128xf32, #tpu.memory_space<vmem>>, vector<1x8x128xf32>
    %21 = vector.shape_cast %20 : vector<1x8x128xf32> to vector<8x128xf32>
    %22 = arith.truncf %18 : vector<8x32xf32> to vector<8x32xbf16>
    %cst_9 = arith.constant dense<0.000000e+00> : vector<8x128xf32>
    %23 = tpu.matmul %22, %0, %cst_9 {dimension_numbers = #tpu.dot_dimension_numbers<[1], [0], [0], [1], [0, 0, 1, 1], [], []>} : vector<8x32xbf16>, vector<32x128xbf16>, vector<8x128xf32> -> vector<8x128xf32>
    %24 = arith.addf %21, %23 : vector<8x128xf32>
    %cst_10 = arith.constant 0.000000e+00 : f32
    %25 = vector.broadcast %cst_10 : f32 to vector<8x128xf32>
    %26 = arith.subf %25, %24 : vector<8x128xf32>
    %27 = math.exp %26 : vector<8x128xf32>
    %cst_11 = arith.constant 1.000000e+00 : f32
    %28 = vector.broadcast %cst_11 : f32 to vector<8x128xf32>
    %29 = arith.addf %28, %27 : vector<8x128xf32>
    %30 = tpu.reciprocal %29 {approx = true} : vector<8x128xf32> -> vector<8x128xf32>
    %31 = vector.extract_strided_slice %30 {offsets = [0, 0], sizes = [8, 32], strides = [1, 1]} : vector<8x128xf32> to vector<8x32xf32>
    %32 = vector.extract_strided_slice %30 {offsets = [0, 32], sizes = [8, 32], strides = [1, 1]} : vector<8x128xf32> to vector<8x32xf32>
    %33 = vector.extract_strided_slice %30 {offsets = [0, 64], sizes = [8, 32], strides = [1, 1]} : vector<8x128xf32> to vector<8x32xf32>
    %34 = vector.extract_strided_slice %30 {offsets = [0, 96], sizes = [8, 32], strides = [1, 1]} : vector<8x128xf32> to vector<8x32xf32>
    %cst_12 = arith.constant 2.000000e+00 : f32
    %35 = vector.broadcast %cst_12 : f32 to vector<8x32xf32>
    %36 = arith.mulf %35, %34 : vector<8x32xf32>
    %cst_13 = arith.constant 1.000000e+00 : f32
    %37 = vector.broadcast %cst_13 : f32 to vector<8x32xf32>
    %38 = arith.subf %36, %37 : vector<8x32xf32>
    %39 = arith.mulf %32, %15 : vector<8x32xf32>
    %40 = arith.mulf %31, %38 : vector<8x32xf32>
    %41 = arith.addf %39, %40 : vector<8x32xf32>
    %42 = math.tanh %41 : vector<8x32xf32>
    %43 = arith.mulf %33, %42 : vector<8x32xf32>
    %c2_i32 = arith.constant 2 : i32
    %44 = arith.index_cast %c2_i32 : i32 to index
    %c0_14 = arith.constant 0 : index
    %c0_15 = arith.constant 0 : index
    %45 = vector.load %arg0[%44, %c0_14, %c0_15] : memref<8x8x128xf32, #tpu.memory_space<vmem>>, vector<1x8x128xf32>
    %46 = vector.shape_cast %45 : vector<1x8x128xf32> to vector<8x128xf32>
    %47 = arith.truncf %43 : vector<8x32xf32> to vector<8x32xbf16>
    %cst_16 = arith.constant dense<0.000000e+00> : vector<8x128xf32>
    %48 = tpu.matmul %47, %0, %cst_16 {dimension_numbers = #tpu.dot_dimension_numbers<[1], [0], [0], [1], [0, 0, 1, 1], [], []>} : vector<8x32xbf16>, vector<32x128xbf16>, vector<8x128xf32> -> vector<8x128xf32>
    %49 = arith.addf %46, %48 : vector<8x128xf32>
    %cst_17 = arith.constant 0.000000e+00 : f32
    %50 = vector.broadcast %cst_17 : f32 to vector<8x128xf32>
    %51 = arith.subf %50, %49 : vector<8x128xf32>
    %52 = math.exp %51 : vector<8x128xf32>
    %cst_18 = arith.constant 1.000000e+00 : f32
    %53 = vector.broadcast %cst_18 : f32 to vector<8x128xf32>
    %54 = arith.addf %53, %52 : vector<8x128xf32>
    %55 = tpu.reciprocal %54 {approx = true} : vector<8x128xf32> -> vector<8x128xf32>
    %56 = vector.extract_strided_slice %55 {offsets = [0, 0], sizes = [8, 32], strides = [1, 1]} : vector<8x128xf32> to vector<8x32xf32>
    %57 = vector.extract_strided_slice %55 {offsets = [0, 32], sizes = [8, 32], strides = [1, 1]} : vector<8x128xf32> to vector<8x32xf32>
    %58 = vector.extract_strided_slice %55 {offsets = [0, 64], sizes = [8, 32], strides = [1, 1]} : vector<8x128xf32> to vector<8x32xf32>
    %59 = vector.extract_strided_slice %55 {offsets = [0, 96], sizes = [8, 32], strides = [1, 1]} : vector<8x128xf32> to vector<8x32xf32>
    %cst_19 = arith.constant 2.000000e+00 : f32
    %60 = vector.broadcast %cst_19 : f32 to vector<8x32xf32>
    %61 = arith.mulf %60, %59 : vector<8x32xf32>
    %cst_20 = arith.constant 1.000000e+00 : f32
    %62 = vector.broadcast %cst_20 : f32 to vector<8x32xf32>
    %63 = arith.subf %61, %62 : vector<8x32xf32>
    %64 = arith.mulf %57, %41 : vector<8x32xf32>
    %65 = arith.mulf %56, %63 : vector<8x32xf32>
    %66 = arith.addf %64, %65 : vector<8x32xf32>
    %67 = math.tanh %66 : vector<8x32xf32>
    %68 = arith.mulf %58, %67 : vector<8x32xf32>
    %c3_i32 = arith.constant 3 : i32
    %69 = arith.index_cast %c3_i32 : i32 to index
    %c0_21 = arith.constant 0 : index
    %c0_22 = arith.constant 0 : index
    %70 = vector.load %arg0[%69, %c0_21, %c0_22] : memref<8x8x128xf32, #tpu.memory_space<vmem>>, vector<1x8x128xf32>
    %71 = vector.shape_cast %70 : vector<1x8x128xf32> to vector<8x128xf32>
    %72 = arith.truncf %68 : vector<8x32xf32> to vector<8x32xbf16>
    %cst_23 = arith.constant dense<0.000000e+00> : vector<8x128xf32>
    %73 = tpu.matmul %72, %0, %cst_23 {dimension_numbers = #tpu.dot_dimension_numbers<[1], [0], [0], [1], [0, 0, 1, 1], [], []>} : vector<8x32xbf16>, vector<32x128xbf16>, vector<8x128xf32> -> vector<8x128xf32>
    %74 = arith.addf %71, %73 : vector<8x128xf32>
    %cst_24 = arith.constant 0.000000e+00 : f32
    %75 = vector.broadcast %cst_24 : f32 to vector<8x128xf32>
    %76 = arith.subf %75, %74 : vector<8x128xf32>
    %77 = math.exp %76 : vector<8x128xf32>
    %cst_25 = arith.constant 1.000000e+00 : f32
    %78 = vector.broadcast %cst_25 : f32 to vector<8x128xf32>
    %79 = arith.addf %78, %77 : vector<8x128xf32>
    %80 = tpu.reciprocal %79 {approx = true} : vector<8x128xf32> -> vector<8x128xf32>
    %81 = vector.extract_strided_slice %80 {offsets = [0, 0], sizes = [8, 32], strides = [1, 1]} : vector<8x128xf32> to vector<8x32xf32>
    %82 = vector.extract_strided_slice %80 {offsets = [0, 32], sizes = [8, 32], strides = [1, 1]} : vector<8x128xf32> to vector<8x32xf32>
    %83 = vector.extract_strided_slice %80 {offsets = [0, 64], sizes = [8, 32], strides = [1, 1]} : vector<8x128xf32> to vector<8x32xf32>
    %84 = vector.extract_strided_slice %80 {offsets = [0, 96], sizes = [8, 32], strides = [1, 1]} : vector<8x128xf32> to vector<8x32xf32>
    %cst_26 = arith.constant 2.000000e+00 : f32
    %85 = vector.broadcast %cst_26 : f32 to vector<8x32xf32>
    %86 = arith.mulf %85, %84 : vector<8x32xf32>
    %cst_27 = arith.constant 1.000000e+00 : f32
    %87 = vector.broadcast %cst_27 : f32 to vector<8x32xf32>
    %88 = arith.subf %86, %87 : vector<8x32xf32>
    %89 = arith.mulf %82, %66 : vector<8x32xf32>
    %90 = arith.mulf %81, %88 : vector<8x32xf32>
    %91 = arith.addf %89, %90 : vector<8x32xf32>
    %92 = math.tanh %91 : vector<8x32xf32>
    %93 = arith.mulf %83, %92 : vector<8x32xf32>
    %c4_i32 = arith.constant 4 : i32
    %94 = arith.index_cast %c4_i32 : i32 to index
    %c0_28 = arith.constant 0 : index
    %c0_29 = arith.constant 0 : index
    %95 = vector.load %arg0[%94, %c0_28, %c0_29] : memref<8x8x128xf32, #tpu.memory_space<vmem>>, vector<1x8x128xf32>
    %96 = vector.shape_cast %95 : vector<1x8x128xf32> to vector<8x128xf32>
    %97 = arith.truncf %93 : vector<8x32xf32> to vector<8x32xbf16>
    %cst_30 = arith.constant dense<0.000000e+00> : vector<8x128xf32>
    %98 = tpu.matmul %97, %0, %cst_30 {dimension_numbers = #tpu.dot_dimension_numbers<[1], [0], [0], [1], [0, 0, 1, 1], [], []>} : vector<8x32xbf16>, vector<32x128xbf16>, vector<8x128xf32> -> vector<8x128xf32>
    %99 = arith.addf %96, %98 : vector<8x128xf32>
    %cst_31 = arith.constant 0.000000e+00 : f32
    %100 = vector.broadcast %cst_31 : f32 to vector<8x128xf32>
    %101 = arith.subf %100, %99 : vector<8x128xf32>
    %102 = math.exp %101 : vector<8x128xf32>
    %cst_32 = arith.constant 1.000000e+00 : f32
    %103 = vector.broadcast %cst_32 : f32 to vector<8x128xf32>
    %104 = arith.addf %103, %102 : vector<8x128xf32>
    %105 = tpu.reciprocal %104 {approx = true} : vector<8x128xf32> -> vector<8x128xf32>
    %106 = vector.extract_strided_slice %105 {offsets = [0, 0], sizes = [8, 32], strides = [1, 1]} : vector<8x128xf32> to vector<8x32xf32>
    %107 = vector.extract_strided_slice %105 {offsets = [0, 32], sizes = [8, 32], strides = [1, 1]} : vector<8x128xf32> to vector<8x32xf32>
    %108 = vector.extract_strided_slice %105 {offsets = [0, 64], sizes = [8, 32], strides = [1, 1]} : vector<8x128xf32> to vector<8x32xf32>
    %109 = vector.extract_strided_slice %105 {offsets = [0, 96], sizes = [8, 32], strides = [1, 1]} : vector<8x128xf32> to vector<8x32xf32>
    %cst_33 = arith.constant 2.000000e+00 : f32
    %110 = vector.broadcast %cst_33 : f32 to vector<8x32xf32>
    %111 = arith.mulf %110, %109 : vector<8x32xf32>
    %cst_34 = arith.constant 1.000000e+00 : f32
    %112 = vector.broadcast %cst_34 : f32 to vector<8x32xf32>
    %113 = arith.subf %111, %112 : vector<8x32xf32>
    %114 = arith.mulf %107, %91 : vector<8x32xf32>
    %115 = arith.mulf %106, %113 : vector<8x32xf32>
    %116 = arith.addf %114, %115 : vector<8x32xf32>
    %117 = math.tanh %116 : vector<8x32xf32>
    %118 = arith.mulf %108, %117 : vector<8x32xf32>
    %c5_i32 = arith.constant 5 : i32
    %119 = arith.index_cast %c5_i32 : i32 to index
    %c0_35 = arith.constant 0 : index
    %c0_36 = arith.constant 0 : index
    %120 = vector.load %arg0[%119, %c0_35, %c0_36] : memref<8x8x128xf32, #tpu.memory_space<vmem>>, vector<1x8x128xf32>
    %121 = vector.shape_cast %120 : vector<1x8x128xf32> to vector<8x128xf32>
    %122 = arith.truncf %118 : vector<8x32xf32> to vector<8x32xbf16>
    %cst_37 = arith.constant dense<0.000000e+00> : vector<8x128xf32>
    %123 = tpu.matmul %122, %0, %cst_37 {dimension_numbers = #tpu.dot_dimension_numbers<[1], [0], [0], [1], [0, 0, 1, 1], [], []>} : vector<8x32xbf16>, vector<32x128xbf16>, vector<8x128xf32> -> vector<8x128xf32>
    %124 = arith.addf %121, %123 : vector<8x128xf32>
    %cst_38 = arith.constant 0.000000e+00 : f32
    %125 = vector.broadcast %cst_38 : f32 to vector<8x128xf32>
    %126 = arith.subf %125, %124 : vector<8x128xf32>
    %127 = math.exp %126 : vector<8x128xf32>
    %cst_39 = arith.constant 1.000000e+00 : f32
    %128 = vector.broadcast %cst_39 : f32 to vector<8x128xf32>
    %129 = arith.addf %128, %127 : vector<8x128xf32>
    %130 = tpu.reciprocal %129 {approx = true} : vector<8x128xf32> -> vector<8x128xf32>
    %131 = vector.extract_strided_slice %130 {offsets = [0, 0], sizes = [8, 32], strides = [1, 1]} : vector<8x128xf32> to vector<8x32xf32>
    %132 = vector.extract_strided_slice %130 {offsets = [0, 32], sizes = [8, 32], strides = [1, 1]} : vector<8x128xf32> to vector<8x32xf32>
    %133 = vector.extract_strided_slice %130 {offsets = [0, 64], sizes = [8, 32], strides = [1, 1]} : vector<8x128xf32> to vector<8x32xf32>
    %134 = vector.extract_strided_slice %130 {offsets = [0, 96], sizes = [8, 32], strides = [1, 1]} : vector<8x128xf32> to vector<8x32xf32>
    %cst_40 = arith.constant 2.000000e+00 : f32
    %135 = vector.broadcast %cst_40 : f32 to vector<8x32xf32>
    %136 = arith.mulf %135, %134 : vector<8x32xf32>
    %cst_41 = arith.constant 1.000000e+00 : f32
    %137 = vector.broadcast %cst_41 : f32 to vector<8x32xf32>
    %138 = arith.subf %136, %137 : vector<8x32xf32>
    %139 = arith.mulf %132, %116 : vector<8x32xf32>
    %140 = arith.mulf %131, %138 : vector<8x32xf32>
    %141 = arith.addf %139, %140 : vector<8x32xf32>
    %142 = math.tanh %141 : vector<8x32xf32>
    %143 = arith.mulf %133, %142 : vector<8x32xf32>
    %c6_i32 = arith.constant 6 : i32
    %144 = arith.index_cast %c6_i32 : i32 to index
    %c0_42 = arith.constant 0 : index
    %c0_43 = arith.constant 0 : index
    %145 = vector.load %arg0[%144, %c0_42, %c0_43] : memref<8x8x128xf32, #tpu.memory_space<vmem>>, vector<1x8x128xf32>
    %146 = vector.shape_cast %145 : vector<1x8x128xf32> to vector<8x128xf32>
    %147 = arith.truncf %143 : vector<8x32xf32> to vector<8x32xbf16>
    %cst_44 = arith.constant dense<0.000000e+00> : vector<8x128xf32>
    %148 = tpu.matmul %147, %0, %cst_44 {dimension_numbers = #tpu.dot_dimension_numbers<[1], [0], [0], [1], [0, 0, 1, 1], [], []>} : vector<8x32xbf16>, vector<32x128xbf16>, vector<8x128xf32> -> vector<8x128xf32>
    %149 = arith.addf %146, %148 : vector<8x128xf32>
    %cst_45 = arith.constant 0.000000e+00 : f32
    %150 = vector.broadcast %cst_45 : f32 to vector<8x128xf32>
    %151 = arith.subf %150, %149 : vector<8x128xf32>
    %152 = math.exp %151 : vector<8x128xf32>
    %cst_46 = arith.constant 1.000000e+00 : f32
    %153 = vector.broadcast %cst_46 : f32 to vector<8x128xf32>
    %154 = arith.addf %153, %152 : vector<8x128xf32>
    %155 = tpu.reciprocal %154 {approx = true} : vector<8x128xf32> -> vector<8x128xf32>
    %156 = vector.extract_strided_slice %155 {offsets = [0, 0], sizes = [8, 32], strides = [1, 1]} : vector<8x128xf32> to vector<8x32xf32>
    %157 = vector.extract_strided_slice %155 {offsets = [0, 32], sizes = [8, 32], strides = [1, 1]} : vector<8x128xf32> to vector<8x32xf32>
    %158 = vector.extract_strided_slice %155 {offsets = [0, 64], sizes = [8, 32], strides = [1, 1]} : vector<8x128xf32> to vector<8x32xf32>
    %159 = vector.extract_strided_slice %155 {offsets = [0, 96], sizes = [8, 32], strides = [1, 1]} : vector<8x128xf32> to vector<8x32xf32>
    %cst_47 = arith.constant 2.000000e+00 : f32
    %160 = vector.broadcast %cst_47 : f32 to vector<8x32xf32>
    %161 = arith.mulf %160, %159 : vector<8x32xf32>
    %cst_48 = arith.constant 1.000000e+00 : f32
    %162 = vector.broadcast %cst_48 : f32 to vector<8x32xf32>
    %163 = arith.subf %161, %162 : vector<8x32xf32>
    %164 = arith.mulf %157, %141 : vector<8x32xf32>
    %165 = arith.mulf %156, %163 : vector<8x32xf32>
    %166 = arith.addf %164, %165 : vector<8x32xf32>
    %167 = math.tanh %166 : vector<8x32xf32>
    %168 = arith.mulf %158, %167 : vector<8x32xf32>
    %c7_i32 = arith.constant 7 : i32
    %169 = arith.index_cast %c7_i32 : i32 to index
    %c0_49 = arith.constant 0 : index
    %c0_50 = arith.constant 0 : index
    %170 = vector.load %arg0[%169, %c0_49, %c0_50] : memref<8x8x128xf32, #tpu.memory_space<vmem>>, vector<1x8x128xf32>
    %171 = vector.shape_cast %170 : vector<1x8x128xf32> to vector<8x128xf32>
    %172 = arith.truncf %168 : vector<8x32xf32> to vector<8x32xbf16>
    %cst_51 = arith.constant dense<0.000000e+00> : vector<8x128xf32>
    %173 = tpu.matmul %172, %0, %cst_51 {dimension_numbers = #tpu.dot_dimension_numbers<[1], [0], [0], [1], [0, 0, 1, 1], [], []>} : vector<8x32xbf16>, vector<32x128xbf16>, vector<8x128xf32> -> vector<8x128xf32>
    %174 = arith.addf %171, %173 : vector<8x128xf32>
    %cst_52 = arith.constant 0.000000e+00 : f32
    %175 = vector.broadcast %cst_52 : f32 to vector<8x128xf32>
    %176 = arith.subf %175, %174 : vector<8x128xf32>
    %177 = math.exp %176 : vector<8x128xf32>
    %cst_53 = arith.constant 1.000000e+00 : f32
    %178 = vector.broadcast %cst_53 : f32 to vector<8x128xf32>
    %179 = arith.addf %178, %177 : vector<8x128xf32>
    %180 = tpu.reciprocal %179 {approx = true} : vector<8x128xf32> -> vector<8x128xf32>
    %181 = vector.extract_strided_slice %180 {offsets = [0, 0], sizes = [8, 32], strides = [1, 1]} : vector<8x128xf32> to vector<8x32xf32>
    %182 = vector.extract_strided_slice %180 {offsets = [0, 32], sizes = [8, 32], strides = [1, 1]} : vector<8x128xf32> to vector<8x32xf32>
    %183 = vector.extract_strided_slice %180 {offsets = [0, 64], sizes = [8, 32], strides = [1, 1]} : vector<8x128xf32> to vector<8x32xf32>
    %184 = vector.extract_strided_slice %180 {offsets = [0, 96], sizes = [8, 32], strides = [1, 1]} : vector<8x128xf32> to vector<8x32xf32>
    %cst_54 = arith.constant 2.000000e+00 : f32
    %185 = vector.broadcast %cst_54 : f32 to vector<8x32xf32>
    %186 = arith.mulf %185, %184 : vector<8x32xf32>
    %cst_55 = arith.constant 1.000000e+00 : f32
    %187 = vector.broadcast %cst_55 : f32 to vector<8x32xf32>
    %188 = arith.subf %186, %187 : vector<8x32xf32>
    %189 = arith.mulf %182, %166 : vector<8x32xf32>
    %190 = arith.mulf %181, %188 : vector<8x32xf32>
    %191 = arith.addf %189, %190 : vector<8x32xf32>
    %192 = math.tanh %191 : vector<8x32xf32>
    %193 = arith.mulf %183, %192 : vector<8x32xf32>
    %c7_i32_56 = arith.constant 7 : i32
    %c0_57 = arith.constant 0 : index
    %c0_58 = arith.constant 0 : index
    %194 = vector.load %arg2[%c0_57, %c0_58] : memref<1x32xf32, #tpu.memory_space<vmem>>, vector<1x32xf32>
    %195 = vector.broadcast %194 : vector<1x32xf32> to vector<8x32xf32>
    %196 = arith.mulf %193, %195 : vector<8x32xf32>
    %cst_59 = arith.constant dense<0.000000e+00> : vector<8xf32>
    %197 = vector.multi_reduction <add>, %196, %cst_59 [1] : vector<8x32xf32> to vector<8xf32>
    %c0_60 = arith.constant 0 : index
    %c0_61 = arith.constant 0 : index
    %198 = memref.load %arg3[%c0_60, %c0_61] : memref<1x1xf32, #tpu.memory_space<smem>>
    %199 = vector.broadcast %198 : f32 to vector<8xf32>
    %200 = arith.addf %197, %199 : vector<8xf32>
    %201 = vector.shape_cast %200 : vector<8xf32> to vector<1x8xf32>
    %c0_62 = arith.constant 0 : index
    %c0_63 = arith.constant 0 : index
    %202 = vector.load %arg4[%c0_62, %c0_63] : memref<1x8xf32, #tpu.memory_space<vmem>>, vector<1x8xf32>
    tpu.vector_store %arg4[%c0_62, %c0_63], %201 {strides = array<i32>} : memref<1x8xf32, #tpu.memory_space<vmem>>, vector<1x8xf32>,
    return
  }
}

</mosaic_0001>

<bundles_post_ra>
// kernel: tpu_custom_call.1
= control target key start
LH: loop header
LB: loop body
LE: loop exit
PB: predicated region body
PF: predicated region fallthrough
CT: control target
= control target key end

     0   :  { %10 = vsyncpa [#allocation4], 0  ;;  %s714_s0 = inlined_call_operand.hbm [shape: f32[8,8,128], index: 0, kind: input, shape index: {}]   ;;  %s715_s1 = inlined_call_operand.hbm [shape: bf16[32,128], index: 1, kind: input, shape index: {}]   ;;  %s716_s2 = inlined_call_operand.vmem [shape: f32[1,32], index: 2, kind: input, shape index: {}]   ;;  %s717_s3 = inlined_call_operand.<no memory space> [shape: f32[1,1], index: 3, kind: input, shape index: {}]   ;;  %s718_s4 = inlined_call_operand.hbm [shape: f32[1,8], index: 4, kind: output, shape index: {}]  }
   0x1   :  { %11 = vsyncpa [#allocation7], 0 }
   0x2   :  { %12 = vsyncpa [#allocation5], 0  ;;  %s17_s17 = sshll.u32 %s714_s0, 4  ;;  %s623_s18 = smov [#allocation3]   ;;  %s18_s17 = int_to_ptr.hbm [resolvable:$true] %s17_s17 }
   0x3   :  { %s19_s19 = sshll.u32 %s623_s18, 4  ;;  %s30_s22 = sshll.u32 %s715_s1, 4  ;;  %s20_s19 = int_to_ptr.vmem [resolvable:$true] %s19_s19  ;;  %s31_s22 = int_to_ptr.hbm [resolvable:$true] %s30_s22 }
   0x4   :  { %s624_s23 = smov 128   ;;  %s625_s24 = smov 8  }
   0x5   :  { %25 = dma.hbm_to_vmem [thread:$0]  %s18_s17, 1024, %s20_s19, [#allocation4], %s624_s23, %s624_s23, %s625_s24  }
   0x6   :  { %s626_s25 = smov [#allocation6]   ;;  %s627_s27 = smov 64  }
   0x7   :  { %s32_s26 = sshll.u32 %s626_s25, 4  ;;  %s628_s28 = smov 4   ;;  %s33_s26 = int_to_ptr.vmem [resolvable:$true] %s32_s26 }
   0x8   :  { %38 = dma.hbm_to_vmem [thread:$0]  %s31_s22, 256, %s33_s26, [#allocation7], %s627_s27, %s627_s27, %s628_s28  }
   0x9   :  { %617 = dma.done.wait [#allocation4], 1024  }
   0xa   :  { %618 = vsyncadd [#allocation4], 4294966272 }
   0xb   :  { %619 = dma.done.wait [#allocation7], 256  }
   0xc   :  { %620 = vsyncadd [#allocation7], 4294967040  ;;  %v56_v0 = vld [vmem:[#allocation3] sm:$0xff]  ;;  %s629_s0 = smov 32   ;;  %v487_v11 = vld [vmem:[#allocation6 + $0x8] sm:$0xff]  ;;  %vm93_vm0 = vcmask 261120  }
   0xd   :  { %v57_v1 = vsub.f32 0.0, %v56_v0  ;;  %103 = vmatpush.bf16.msra.mxu0 %v487_v11  ;;  %v486_v12 = vld [vmem:[#allocation6] sm:$0xff]  ;;  %154 = vmatpush.bf16.msra.mxu1 %v487_v11  ;;  %v76_v17 = vld [vmem:[#allocation3 + $0x8] sm:$0xff]  ;;  %v140_v39 = vld [vmem:[#allocation3 + $0x10] sm:$0xff]  ;;  %s630_s5 = smov [#allocation8]   ;;  %s452_s9 = sshll.u32 %s718_s4, 4  ;;  %s453_s9 = int_to_ptr.hbm [resolvable:$true] %s452_s9 }
   0xe   :  { %201 = vmatpush.bf16.msra.mxu2 %v487_v11  ;;  %248 = vmatpush.bf16.msra.mxu3 %v487_v11  ;;  %v187_v60 = vld [vmem:[#allocation3 + $0x18] sm:$0xff]  ;;  %s450_s6 = sshll.u32 %s630_s5, 4  ;;  %vm443_vm1 = vcmask 57344   ;;  %s451_s6 = int_to_ptr.vmem [resolvable:$true] %s450_s6 }
   0xf   :  { %v58_v2 = vmul.f32 1.442695, %v57_v1 }
  0x11   :  { %497 = vpow2.f32 %v58_v2  ;;  %104 = vmatpush.bf16.msra.mxu0 %v486_v12  ;;  %155 = vmatpush.bf16.msra.mxu1 %v486_v12 }
  0x12   :  { %202 = vmatpush.bf16.msra.mxu2 %v486_v12  ;;  %249 = vmatpush.bf16.msra.mxu3 %v486_v12 }
  0x15   :  { %295 = vmatpush.bf16.msrb.mxu0 %v487_v11  ;;  %342 = vmatpush.bf16.msrb.mxu1 %v487_v11 }
  0x16   :  { %389 = vmatpush.bf16.msrb.mxu2 %v487_v11 }
  0x17   :  { %v498_v3 = vpop.eup %497 }
  0x18   :  { %v60_v4 = vadd.f32 1.0, %v498_v3 }
  0x19   :  { %296 = vmatpush.bf16.msrb.mxu0 %v486_v12  ;;  %343 = vmatpush.bf16.msrb.mxu1 %v486_v12 }
  0x1a   :  { %499 = vrcp.f32 %v60_v4  ;;  %390 = vmatpush.bf16.msrb.mxu2 %v486_v12 }
  0x20   :  { %v500_v5 = vpop.eup %499 }
  0x21   :  { %v62_v6 = vmul.f32 2.0, %v500_v5 }
  0x23   :  { %v463_v7 = vadd.f32 -1.0, %v62_v6 }
  0x25   :  { %65 = vrot.lane.b32.xlu0 %v463_v7, %s629_s0 }
  0x97   :  { %v66_v8 = vpop.permute.xlu0 %65 }
  0x98   :  { %v68_v9 = vmul.f32 %v500_v5, %v66_v8 }
  0x9a   :  { %501 = vtanh.f32 %v68_v9  ;;  %119 = vrot.lane.b32.xlu2 %v68_v9, %s629_s0 }
  0xa0   :  { %v502_v10 = vpop.eup %501 }
  0xa1   :  { %71 = vrot.lane.b32.xlu0 %v502_v10, %s627_s27 }
  0xf4   :  { %v120_v30 = vpop.permute.xlu2 %119 }
 0x113   :  { %v72_v13 = vpop.permute.xlu0 %71 }
 0x114   :  { %v74_v14 = vmul.f32 %v500_v5, %v72_v13 }
 0x116   :  { %v77_v15 = vpack.c.bf16 %v74_v14, %v74_v14 }
 0x118   :  { %79 = vrot.lane.b32.xlu1 %v77_v15, %s627_s27 }
 0x18a   :  { %v80_v16 = vpop.permute.xlu1 %79 }
 0x18b   :  { %472 = vmatmul.msk.bf16.vlgmr.msra.gmra.mxu0 %vm93_vm0, %v80_v16 }
 0x208   :  { %v106_v18 = vpop.f32.mrf.mxu0 }
 0x209   :  { %v110_v19 = vadd.f32 %v106_v18, %v76_v17  ;;  %v234_v17 = vld [vmem:[#allocation3 + $0x20] sm:$0xff] }
 0x20b   :  { %v111_v20 = vsub.f32 0.0, %v110_v19 }
 0x20d   :  { %v112_v21 = vmul.f32 1.442695, %v111_v20 }
 0x20f   :  { %503 = vpow2.f32 %v112_v21 }
 0x210   :  { %v108_v22 = vpop.f32.mrf.mxu0 }
 0x215   :  { %v504_v23 = vpop.eup %503 }
 0x216   :  { %v114_v24 = vadd.f32 1.0, %v504_v23 }
 0x218   :  { %505 = vrcp.f32 %v114_v24 }
 0x21e   :  { %v506_v25 = vpop.eup %505 }
 0x21f   :  { %v116_v26 = vmul.f32 2.0, %v506_v25  ;;  %v122_v31 = vmul.f32 %v506_v25, %v120_v30 }
 0x221   :  { %v473_v27 = vadd.f32 -1.0, %v116_v26 }
 0x223   :  { %124 = vrot.lane.b32.xlu1 %v473_v27, %s629_s0 }
 0x295   :  { %v125_v28 = vpop.permute.xlu1 %124 }
 0x296   :  { %v127_v29 = vmul.f32 %v506_v25, %v125_v28 }
 0x298   :  { %129 = vrot.lane.b32.xlu2 %v127_v29, %s629_s0 }
 0x2f2   :  { %v130_v32 = vpop.permute.xlu2 %129 }
 0x2f3   :  { %v132_v33 = vadd.f32 %v130_v32, %v122_v31 }
 0x2f5   :  { %507 = vtanh.f32 %v132_v33 }
 0x2fb   :  { %v508_v34 = vpop.eup %507 }
 0x2fc   :  { %135 = vrot.lane.b32.xlu0 %v508_v34, %s629_s0 }
 0x36e   :  { %v136_v35 = vpop.permute.xlu0 %135 }
 0x36f   :  { %v138_v36 = vmul.f32 %v506_v25, %v136_v35 }
 0x371   :  { %v141_v37 = vpack.c.bf16 %v138_v36, %v138_v36 }
 0x373   :  { %143 = vrot.lane.b32.xlu1 %v141_v37, %s627_s27 }
 0x3e5   :  { %v144_v38 = vpop.permute.xlu1 %143 }
 0x3e6   :  { %474 = vmatmul.msk.bf16.vlgmr.msra.gmra.mxu1 %vm93_vm0, %v144_v38  ;;  %v281_v38 = vld [vmem:[#allocation3 + $0x28] sm:$0xff] }
 0x463   :  { %v157_v40 = vpop.f32.mrf.mxu1 }
 0x464   :  { %v161_v41 = vadd.f32 %v157_v40, %v140_v39 }
 0x466   :  { %v162_v42 = vsub.f32 0.0, %v161_v41 }
 0x468   :  { %v163_v43 = vmul.f32 1.442695, %v162_v42 }
 0x46a   :  { %509 = vpow2.f32 %v163_v43 }
 0x46b   :  { %v159_v44 = vpop.f32.mrf.mxu1 }
 0x470   :  { %v510_v45 = vpop.eup %509 }
 0x471   :  { %v165_v46 = vadd.f32 1.0, %v510_v45 }
 0x473   :  { %511 = vrcp.f32 %v165_v46 }
 0x479   :  { %v512_v47 = vpop.eup %511 }
 0x47a   :  { %v167_v48 = vmul.f32 2.0, %v512_v47  ;;  %v169_v52 = vmul.f32 %v512_v47, %v132_v33 }
 0x47c   :  { %v475_v49 = vadd.f32 -1.0, %v167_v48 }
 0x47e   :  { %171 = vrot.lane.b32.xlu2 %v475_v49, %s629_s0 }
 0x4d8   :  { %v172_v50 = vpop.permute.xlu2 %171 }
 0x4d9   :  { %v174_v51 = vmul.f32 %v512_v47, %v172_v50 }
 0x4db   :  { %176 = vrot.lane.b32.xlu0 %v174_v51, %s629_s0 }
 0x54d   :  { %v177_v53 = vpop.permute.xlu0 %176 }
 0x54e   :  { %v179_v54 = vadd.f32 %v177_v53, %v169_v52 }
 0x550   :  { %513 = vtanh.f32 %v179_v54 }
 0x556   :  { %v514_v55 = vpop.eup %513 }
 0x557   :  { %182 = vrot.lane.b32.xlu1 %v514_v55, %s629_s0 }
 0x5c9   :  { %v183_v56 = vpop.permute.xlu1 %182 }
 0x5ca   :  { %v185_v57 = vmul.f32 %v512_v47, %v183_v56 }
 0x5cc   :  { %v188_v58 = vpack.c.bf16 %v185_v57, %v185_v57 }
 0x5ce   :  { %190 = vrot.lane.b32.xlu2 %v188_v58, %s627_s27 }
 0x628   :  { %v191_v59 = vpop.permute.xlu2 %190 }
 0x629   :  { %476 = vmatmul.msk.bf16.vlgmr.msra.gmra.mxu2 %vm93_vm0, %v191_v59  ;;  %v328_v59 = vld [vmem:[#allocation3 + $0x30] sm:$0xff] }
 0x6ac   :  { %v204_v61 = vpop.f32.mrf.mxu2 }
 0x6ad   :  { %v208_v62 = vadd.f32 %v204_v61, %v187_v60 }
 0x6af   :  { %v209_v63 = vsub.f32 0.0, %v208_v62 }
 0x6b1   :  { %v210_v0 = vmul.f32 1.442695, %v209_v63 }
 0x6b3   :  { %515 = vpow2.f32 %v210_v0 }
 0x6b4   :  { %v206_v1 = vpop.f32.mrf.mxu2 }
 0x6b9   :  { %v516_v2 = vpop.eup %515 }
 0x6ba   :  { %v212_v3 = vadd.f32 1.0, %v516_v2 }
 0x6bc   :  { %517 = vrcp.f32 %v212_v3 }
 0x6c2   :  { %v518_v4 = vpop.eup %517 }
 0x6c3   :  { %v214_v5 = vmul.f32 2.0, %v518_v4  ;;  %v216_v9 = vmul.f32 %v518_v4, %v179_v54 }
 0x6c5   :  { %v477_v6 = vadd.f32 -1.0, %v214_v5 }
 0x6c7   :  { %218 = vrot.lane.b32.xlu0 %v477_v6, %s629_s0 }
 0x739   :  { %v219_v7 = vpop.permute.xlu0 %218 }
 0x73a   :  { %v221_v8 = vmul.f32 %v518_v4, %v219_v7 }
 0x73c   :  { %223 = vrot.lane.b32.xlu1 %v221_v8, %s629_s0 }
 0x7ae   :  { %v224_v10 = vpop.permute.xlu1 %223 }
 0x7af   :  { %v226_v11 = vadd.f32 %v224_v10, %v216_v9 }
 0x7b1   :  { %519 = vtanh.f32 %v226_v11 }
 0x7b7   :  { %v520_v12 = vpop.eup %519 }
 0x7b8   :  { %229 = vrot.lane.b32.xlu2 %v520_v12, %s629_s0 }
 0x812   :  { %v230_v13 = vpop.permute.xlu2 %229 }
 0x813   :  { %v232_v14 = vmul.f32 %v518_v4, %v230_v13 }
 0x815   :  { %v235_v15 = vpack.c.bf16 %v232_v14, %v232_v14 }
 0x817   :  { %237 = vrot.lane.b32.xlu0 %v235_v15, %s627_s27 }
 0x889   :  { %v238_v16 = vpop.permute.xlu0 %237 }
 0x88a   :  { %478 = vmatmul.msk.bf16.vlgmr.msra.gmra.mxu3 %vm93_vm0, %v238_v16  ;;  %v375_v16 = vld [vmem:[#allocation3 + $0x38] sm:$0xff] }
 0x90d   :  { %v251_v18 = vpop.f32.mrf.mxu3 }
 0x90e   :  { %v255_v19 = vadd.f32 %v251_v18, %v234_v17 }
 0x910   :  { %v256_v20 = vsub.f32 0.0, %v255_v19 }
 0x912   :  { %v257_v21 = vmul.f32 1.442695, %v256_v20 }
 0x914   :  { %521 = vpow2.f32 %v257_v21 }
 0x915   :  { %v253_v22 = vpop.f32.mrf.mxu3 }
 0x91a   :  { %v522_v23 = vpop.eup %521 }
 0x91b   :  { %v259_v24 = vadd.f32 1.0, %v522_v23 }
 0x91d   :  { %523 = vrcp.f32 %v259_v24 }
 0x923   :  { %v524_v25 = vpop.eup %523 }
 0x924   :  { %v261_v26 = vmul.f32 2.0, %v524_v25  ;;  %v263_v30 = vmul.f32 %v524_v25, %v226_v11 }
 0x926   :  { %v479_v27 = vadd.f32 -1.0, %v261_v26 }
 0x928   :  { %265 = vrot.lane.b32.xlu1 %v479_v27, %s629_s0 }
 0x99a   :  { %v266_v28 = vpop.permute.xlu1 %265 }
 0x99b   :  { %v268_v29 = vmul.f32 %v524_v25, %v266_v28 }
 0x99d   :  { %270 = vrot.lane.b32.xlu2 %v268_v29, %s629_s0  ;;  %v496_v29 = vld [vmem:[%s716_s2] ss:$0 sm:$0xff] }
 0x9f7   :  { %v271_v31 = vpop.permute.xlu2 %270 }
 0x9f8   :  { %v273_v32 = vadd.f32 %v271_v31, %v263_v30 }
 0x9fa   :  { %525 = vtanh.f32 %v273_v32 }
 0xa00   :  { %v526_v33 = vpop.eup %525 }
 0xa01   :  { %276 = vrot.lane.b32.xlu0 %v526_v33, %s629_s0 }
 0xa73   :  { %v277_v34 = vpop.permute.xlu0 %276 }
 0xa74   :  { %v279_v35 = vmul.f32 %v524_v25, %v277_v34 }
 0xa76   :  { %v282_v36 = vpack.c.bf16 %v279_v35, %v279_v35 }
 0xa78   :  { %284 = vrot.lane.b32.xlu1 %v282_v36, %s627_s27 }
 0xaea   :  { %v285_v37 = vpop.permute.xlu1 %284 }
 0xaeb   :  { %480 = vmatmul.msk.bf16.vlgmr.msrb.gmra.mxu0 %vm93_vm0, %v285_v37 }
 0xb68   :  { %v298_v39 = vpop.f32.mrf.mxu0 }
 0xb69   :  { %v302_v40 = vadd.f32 %v298_v39, %v281_v38 }
 0xb6b   :  { %v303_v41 = vsub.f32 0.0, %v302_v40  ;;  %v439_v40 = vlaneseq }
 0xb6d   :  { %v304_v42 = vmul.f32 1.442695, %v303_v41  ;;  %v436_v41 = vstv %s717_s3 }
 0xb6f   :  { %527 = vpow2.f32 %v304_v42  ;;  %v440_v42 = vand.u32 127, %v439_v40 }
 0xb70   :  { %v300_v43 = vpop.f32.mrf.mxu0 }
 0xb75   :  { %v528_v44 = vpop.eup %527 }
 0xb76   :  { %v306_v45 = vadd.f32 1.0, %v528_v44 }
 0xb78   :  { %529 = vrcp.f32 %v306_v45 }
 0xb7e   :  { %v530_v46 = vpop.eup %529 }
 0xb7f   :  { %v308_v47 = vmul.f32 2.0, %v530_v46  ;;  %v310_v51 = vmul.f32 %v530_v46, %v273_v32 }
 0xb81   :  { %v481_v48 = vadd.f32 -1.0, %v308_v47 }
 0xb83   :  { %312 = vrot.lane.b32.xlu2 %v481_v48, %s629_s0 }
 0xbdd   :  { %v313_v49 = vpop.permute.xlu2 %312 }
 0xbde   :  { %v315_v50 = vmul.f32 %v530_v46, %v313_v49 }
 0xbe0   :  { %317 = vrot.lane.b32.xlu0 %v315_v50, %s629_s0 }
 0xc52   :  { %v318_v52 = vpop.permute.xlu0 %317 }
 0xc53   :  { %v320_v53 = vadd.f32 %v318_v52, %v310_v51 }
 0xc55   :  { %531 = vtanh.f32 %v320_v53 }
 0xc5b   :  { %v532_v54 = vpop.eup %531 }
 0xc5c   :  { %323 = vrot.lane.b32.xlu1 %v532_v54, %s629_s0 }
 0xcce   :  { %v324_v55 = vpop.permute.xlu1 %323 }
 0xccf   :  { %v326_v56 = vmul.f32 %v530_v46, %v324_v55 }
 0xcd1   :  { %v329_v57 = vpack.c.bf16 %v326_v56, %v326_v56 }
 0xcd3   :  { %331 = vrot.lane.b32.xlu2 %v329_v57, %s627_s27 }
 0xd2d   :  { %v332_v58 = vpop.permute.xlu2 %331 }
 0xd2e   :  { %482 = vmatmul.msk.bf16.vlgmr.msrb.gmra.mxu1 %vm93_vm0, %v332_v58 }
 0xdab   :  { %v345_v60 = vpop.f32.mrf.mxu1 }
 0xdac   :  { %v349_v61 = vadd.f32 %v345_v60, %v328_v59 }
 0xdae   :  { %v350_v62 = vsub.f32 0.0, %v349_v61 }
 0xdb0   :  { %v351_v63 = vmul.f32 1.442695, %v350_v62 }
 0xdb2   :  { %533 = vpow2.f32 %v351_v63 }
 0xdb3   :  { %v347_v0 = vpop.f32.mrf.mxu1 }
 0xdb8   :  { %v534_v1 = vpop.eup %533 }
 0xdb9   :  { %v353_v2 = vadd.f32 1.0, %v534_v1 }
 0xdbb   :  { %535 = vrcp.f32 %v353_v2 }
 0xdc1   :  { %v536_v3 = vpop.eup %535 }
 0xdc2   :  { %v355_v4 = vmul.f32 2.0, %v536_v3  ;;  %v357_v8 = vmul.f32 %v536_v3, %v320_v53 }
 0xdc4   :  { %v483_v5 = vadd.f32 -1.0, %v355_v4 }
 0xdc6   :  { %359 = vrot.lane.b32.xlu0 %v483_v5, %s629_s0 }
 0xe38   :  { %v360_v6 = vpop.permute.xlu0 %359 }
 0xe39   :  { %v362_v7 = vmul.f32 %v536_v3, %v360_v6 }
 0xe3b   :  { %364 = vrot.lane.b32.xlu1 %v362_v7, %s629_s0 }
 0xead   :  { %v365_v9 = vpop.permute.xlu1 %364 }
 0xeae   :  { %v367_v10 = vadd.f32 %v365_v9, %v357_v8 }
 0xeb0   :  { %537 = vtanh.f32 %v367_v10 }
 0xeb6   :  { %v538_v11 = vpop.eup %537 }
 0xeb7   :  { %370 = vrot.lane.b32.xlu2 %v538_v11, %s629_s0 }
 0xf11   :  { %v371_v12 = vpop.permute.xlu2 %370 }
 0xf12   :  { %v373_v13 = vmul.f32 %v536_v3, %v371_v12 }
 0xf14   :  { %v376_v14 = vpack.c.bf16 %v373_v13, %v373_v13 }
 0xf16   :  { %378 = vrot.lane.b32.xlu0 %v376_v14, %s627_s27 }
 0xf88   :  { %v379_v15 = vpop.permute.xlu0 %378 }
 0xf89   :  { %484 = vmatmul.msk.bf16.vlgmr.msrb.gmra.mxu2 %vm93_vm0, %v379_v15 }
0x100c   :  { %v392_v17 = vpop.f32.mrf.mxu2 }
0x100d   :  { %v396_v18 = vadd.f32 %v392_v17, %v375_v16 }
0x100f   :  { %v397_v19 = vsub.f32 0.0, %v396_v18 }
0x1011   :  { %v398_v20 = vmul.f32 1.442695, %v397_v19 }
0x1013   :  { %539 = vpow2.f32 %v398_v20 }
0x1014   :  { %v394_v21 = vpop.f32.mrf.mxu2 }
0x1019   :  { %v540_v22 = vpop.eup %539 }
0x101a   :  { %v400_v23 = vadd.f32 1.0, %v540_v22 }
0x101c   :  { %541 = vrcp.f32 %v400_v23 }
0x1022   :  { %v542_v24 = vpop.eup %541 }
0x1023   :  { %v402_v25 = vmul.f32 2.0, %v542_v24  ;;  %v404_v30 = vmul.f32 %v542_v24, %v367_v10 }
0x1025   :  { %v485_v26 = vadd.f32 -1.0, %v402_v25 }
0x1027   :  { %406 = vrot.lane.b32.xlu1 %v485_v26, %s629_s0 }
0x102f   :  { %424 = vrot.lane.b32.xlu1 %v496_v29, %s627_s27 }
0x1099   :  { %v407_v27 = vpop.permute.xlu1 %406 }
0x109a   :  { %v409_v28 = vmul.f32 %v542_v24, %v407_v27 }
0x109c   :  { %411 = vrot.lane.b32.xlu2 %v409_v28, %s629_s0 }
0x10a1   :  { %v425_v35 = vpop.permute.xlu1 %424 }
0x10f6   :  { %v412_v31 = vpop.permute.xlu2 %411 }
0x10f7   :  { %v414_v32 = vadd.f32 %v412_v31, %v404_v30 }
0x10f9   :  { %543 = vtanh.f32 %v414_v32 }
0x10ff   :  { %v544_v33 = vpop.eup %543 }
0x1100   :  { %417 = vrot.lane.b32.xlu0 %v544_v33, %s629_s0 }
0x1172   :  { %v418_v34 = vpop.permute.xlu0 %417 }
0x1173   :  { %v420_v36 = vmul.f32 %v542_v24, %v418_v34 }
0x1175   :  { %v427_v37 = vmul.f32 %v425_v35, %v420_v36 }
0x1177   :  { %429 = vrot.lane.b32.xlu2 %v427_v37, %s627_s27 }
0x11d1   :  { %v430_v38 = vpop.permute.xlu2 %429 }
0x11d2   :  { %v432_v39 = vsel %vm93_vm0, %v430_v38, 0.0 }
0x11d3   :  { %433 = vadd.xlane.f32.xlu0 %v432_v39 }
0x1246   :  { %v434_v43 = vpop.xlane.xlu0 %433 }
0x1247   :  { %v437_v44 = vadd.f32 %v436_v41, %v434_v43 }
0x1249   :  { %v441_v45 = vperm.slane %v437_v44, %v440_v42 }
0x124b   :  { %444 = vst.msk [vmem:[#allocation8] sm:$0x1] %vm443_vm1, %v441_v45 }
0x124c   :  { %455 = dma.vmem_to_hbm [thread:$0]  %s451_s6, 16, %s453_s9, [#allocation5]  }
0x124d   :  { %621 = dma.done.wait [#allocation5], 16  }
0x124e   :  { %622 = vsyncadd [#allocation5], 4294967280 }
0x124f   :  { %460 = vsyncpa [#allocation4], 1 }
0x1250   :  { %461 = vsyncpa [#allocation7], 1 }
0x1251   :  { %462 = vsyncpa [#allocation5], 1 }

</bundles_post_ra>
